<compile_context>
chip_gen: v7x
topology: tpu7x:2x2x1
jax: 0.10.0
libtpu: 0.0.40
codegen_flags: <defaults>
</compile_context>

<pallas_src>
import jax
import jax.numpy as jnp
from jax.experimental import pallas as pl
from jax.experimental.pallas import tpu as pltpu


def _make_conv_kernel(K, Ho):
    def kernel(x_ref, w_ref, b_ref, o_ref):
        # x_ref: (1, Hp, Wp*Cin)   w_ref: (K, Wp*Cin, Wo*Cout)
        # b_ref: (1, Wo*Cout)      o_ref: (1, Ho, Wo*Cout)
        x = x_ref[0]                                              # (Hp, Wp*Cin) in VMEM
        acc = jnp.dot(x[0:Ho, :], w_ref[0], preferred_element_type=jnp.float32)
        for kh in range(1, K):                                    # K is tiny & static: unrolled
            acc += jnp.dot(x[kh:kh + Ho, :], w_ref[kh],
                           preferred_element_type=jnp.float32)
        acc = acc + b_ref[...]                                    # bias broadcast over rows
        o_ref[0] = jnp.maximum(acc, 0.0).astype(o_ref.dtype)      # ReLU
    return kernel


def conv_layer(x_nchw, w_pt, bias):
    """Forward of ConvLayer(in, out, k, stride=1, activation='relu', norm=None).

    x_nchw: (N, Cin, H, W) f32       (PyTorch NCHW input convention)
    w_pt:   (Cout, Cin, K, K) f32    (PyTorch nn.Conv2d weight layout)
    bias:   (Cout,) f32
    returns (N, Cout, H, W) f32      (matches PyTorch output exactly)
    """
    N, Cin, H, W = x_nchw.shape
    Cout, _, K, _ = w_pt.shape
    p = K // 2
    Ho, Wo = H, W                                 # stride=1, padding=k//2 => same spatial size
    Hp, Wp = H + 2 * p, W + 2 * p
    WpC = Wp * Cin
    WoC = Wo * Cout

    # --- tiny wrapper glue (no im2col, no data inflation) ----------------------------------
    x_nhwc = jnp.transpose(x_nchw, (0, 2, 3, 1))
    x_pad = jnp.pad(x_nhwc, ((0, 0), (p, p), (p, p), (0, 0)))
    x_flat = x_pad.reshape(N, Hp, WpC)            # lane axis = (w, ci), contiguous per row

    # Banded weight: W_big[kh, w_in*Cin+ci, wo*Cout+co] = w[co, ci, kh, w_in - wo]
    # for 0 <= w_in - wo < K, else 0.  Folds the kw & Cin contraction into one lane-dense
    # (WpC, WoC) matmul per vertical tap kh.
    w_hwio = jnp.transpose(w_pt, (2, 3, 1, 0))    # (kh, kw, ci, co)
    shift = (jnp.arange(Wp)[None, :, None]
             == (jnp.arange(Wo)[None, None, :] + jnp.arange(K)[:, None, None]))
    shift = shift.astype(x_nchw.dtype)            # (kw, w_in, wo)
    w_big = jnp.einsum('qpv,hqic->hpivc', shift, w_hwio)   # (kh, w_in, ci, wo, co)
    w_big = w_big.reshape(K, WpC, WoC)

    b_tiled = jnp.tile(bias, Wo).reshape(1, WoC)  # index wo*Cout + co -> bias[co]

    # --- Pallas kernel: per-image lane-dense conv + bias + ReLU -----------------------------
    out2d = pl.pallas_call(
        _make_conv_kernel(K, Ho),
        out_shape=jax.ShapeDtypeStruct((N, Ho, WoC), jnp.float32),
        grid_spec=pltpu.PrefetchScalarGridSpec(
            num_scalar_prefetch=0,
            grid=(N,),
            in_specs=[
                pl.BlockSpec((1, Hp, WpC), lambda n: (n, 0, 0)),
                pl.BlockSpec((K, WpC, WoC), lambda n: (0, 0, 0)),
                pl.BlockSpec((1, WoC), lambda n: (0, 0)),
            ],
            out_specs=pl.BlockSpec((1, Ho, WoC), lambda n: (n, 0, 0)),
        ),
        compiler_params=pltpu.CompilerParams(dimension_semantics=("parallel",)),
    )(x_flat, w_big, b_tiled)

    out = out2d.reshape(N, Ho, Wo, Cout)
    return jnp.transpose(out, (0, 3, 1, 2))       # back to NCHW (tiny)


if __name__ == "__main__":
    # module config: ConvLayer(in_channels=4, out_channels=8, kernel_size=3,
    #                          stride=1, activation='relu', norm=None)
    N, Cin, H, W = 2, 4, 16, 16
    Cout, K = 8, 3

    key = jax.random.PRNGKey(0)
    kx, kw, kb = jax.random.split(key, 3)
    x = jax.random.normal(kx, (N, Cin, H, W), dtype=jnp.float32)
    w_pt = jax.random.normal(kw, (Cout, Cin, K, K), dtype=jnp.float32) * 0.1
    bias = jax.random.normal(kb, (Cout,), dtype=jnp.float32) * 0.1

    out = jax.jit(conv_layer)(x, w_pt, bias)
    out = jax.block_until_ready(out)
    assert out.shape == (N, Cout, H, W), out.shape

    # independent reference: XLA conv + bias + ReLU
    ref = jax.lax.conv_general_dilated(
        x, w_pt, window_strides=(1, 1),
        padding=[(K // 2, K // 2), (K // 2, K // 2)],
        dimension_numbers=("NCHW", "OIHW", "NCHW"),
    ) + bias[None, :, None, None]
    ref = jnp.maximum(ref, 0.0)

    assert jnp.allclose(out, ref, atol=1e-4, rtol=1e-4), float(jnp.max(jnp.abs(out - ref)))
    print("KERNEL_OK")
</pallas_src>

<mosaic_0001>
module attributes {stable_mosaic.version = 11 : i64} {
  func.func @kernel(%arg0: i32, %arg1: memref<1x18x72xf32, #tpu.memory_space<vmem>>, %arg2: memref<3x72x128xf32, #tpu.memory_space<vmem>>, %arg3: memref<1x128xf32, #tpu.memory_space<vmem>>, %arg4: memref<1x16x128xf32, #tpu.memory_space<vmem>>) attributes {dimension_semantics = [#tpu.dimension_semantics<parallel>], iteration_bounds = array<i64: 2>, scalar_prefetch = 0 : i64, scratch_operands = 0 : i64, tpu.core_type = #tpu.core_type<tc>, window_params = [{transform_indices = @transform_0, window_bounds = array<i64: 1, 18, 72>}, {pipeline_mode = #tpu.pipeline_mode<synchronous>, transform_indices = @transform_1, window_bounds = array<i64: 3, 72, 128>}, {pipeline_mode = #tpu.pipeline_mode<synchronous>, transform_indices = @transform_2, window_bounds = array<i64: 1, 128>}, {transform_indices = @transform_3, window_bounds = array<i64: 1, 16, 128>}]} {
    %c0 = arith.constant 0 : index
    %c0_0 = arith.constant 0 : index
    %c0_1 = arith.constant 0 : index
    %0 = vector.load %arg1[%c0, %c0_0, %c0_1] : memref<1x18x72xf32, #tpu.memory_space<vmem>>, vector<1x18x72xf32>
    %1 = vector.shape_cast %0 : vector<1x18x72xf32> to vector<18x72xf32>
    %2 = vector.extract_strided_slice %1 {offsets = [0, 0], sizes = [16, 72], strides = [1, 1]} : vector<18x72xf32> to vector<16x72xf32>
    %c0_2 = arith.constant 0 : index
    %c0_3 = arith.constant 0 : index
    %c0_4 = arith.constant 0 : index
    %3 = vector.load %arg2[%c0_2, %c0_3, %c0_4] : memref<3x72x128xf32, #tpu.memory_space<vmem>>, vector<1x72x128xf32>
    %4 = vector.shape_cast %3 : vector<1x72x128xf32> to vector<72x128xf32>
    %cst = arith.constant dense<0.000000e+00> : vector<16x128xf32>
    %5 = tpu.matmul %2, %4, %cst {dimension_numbers = #tpu.dot_dimension_numbers<[1], [0], [0], [1], [0, 0, 1, 1], [], []>} : vector<16x72xf32>, vector<72x128xf32>, vector<16x128xf32> -> vector<16x128xf32>
    %6 = vector.extract_strided_slice %1 {offsets = [1, 0], sizes = [16, 72], strides = [1, 1]} : vector<18x72xf32> to vector<16x72xf32>
    %c1 = arith.constant 1 : index
    %c0_5 = arith.constant 0 : index
    %c0_6 = arith.constant 0 : index
    %7 = vector.load %arg2[%c1, %c0_5, %c0_6] : memref<3x72x128xf32, #tpu.memory_space<vmem>>, vector<1x72x128xf32>
    %8 = vector.shape_cast %7 : vector<1x72x128xf32> to vector<72x128xf32>
    %cst_7 = arith.constant dense<0.000000e+00> : vector<16x128xf32>
    %9 = tpu.matmul %6, %8, %cst_7 {dimension_numbers = #tpu.dot_dimension_numbers<[1], [0], [0], [1], [0, 0, 1, 1], [], []>} : vector<16x72xf32>, vector<72x128xf32>, vector<16x128xf32> -> vector<16x128xf32>
    %10 = arith.addf %5, %9 : vector<16x128xf32>
    %11 = vector.extract_strided_slice %1 {offsets = [2, 0], sizes = [16, 72], strides = [1, 1]} : vector<18x72xf32> to vector<16x72xf32>
    %c2 = arith.constant 2 : index
    %c0_8 = arith.constant 0 : index
    %c0_9 = arith.constant 0 : index
    %12 = vector.load %arg2[%c2, %c0_8, %c0_9] : memref<3x72x128xf32, #tpu.memory_space<vmem>>, vector<1x72x128xf32>
    %13 = vector.shape_cast %12 : vector<1x72x128xf32> to vector<72x128xf32>
    %cst_10 = arith.constant dense<0.000000e+00> : vector<16x128xf32>
    %14 = tpu.matmul %11, %13, %cst_10 {dimension_numbers = #tpu.dot_dimension_numbers<[1], [0], [0], [1], [0, 0, 1, 1], [], []>} : vector<16x72xf32>, vector<72x128xf32>, vector<16x128xf32> -> vector<16x128xf32>
    %15 = arith.addf %10, %14 : vector<16x128xf32>
    %c0_11 = arith.constant 0 : index
    %c0_12 = arith.constant 0 : index
    %16 = vector.load %arg3[%c0_11, %c0_12] : memref<1x128xf32, #tpu.memory_space<vmem>>, vector<1x128xf32>
    %17 = vector.broadcast %16 : vector<1x128xf32> to vector<16x128xf32>
    %18 = arith.addf %15, %17 : vector<16x128xf32>
    %cst_13 = arith.constant 0.000000e+00 : f32
    %19 = vector.broadcast %cst_13 : f32 to vector<16x128xf32>
    %20 = arith.maximumf %18, %19 : vector<16x128xf32>
    %c0_14 = arith.constant 0 : index
    %c0_15 = arith.constant 0 : index
    %c0_16 = arith.constant 0 : index
    %21 = vector.load %arg4[%c0_14, %c0_15, %c0_16] : memref<1x16x128xf32, #tpu.memory_space<vmem>>, vector<1x16x128xf32>
    %22 = vector.shape_cast %21 : vector<1x16x128xf32> to vector<16x128xf32>
    %23 = vector.shape_cast %20 : vector<16x128xf32> to vector<1x16x128xf32>
    tpu.vector_store %arg4[%c0_14, %c0_15, %c0_16], %23 {strides = array<i32>} : memref<1x16x128xf32, #tpu.memory_space<vmem>>, vector<1x16x128xf32>,
    return
  }
  func.func @transform_0(%arg0: i32) -> (i32, i32, i32) {
    %c0_i32 = arith.constant 0 : i32
    %c0_i32_0 = arith.constant 0 : i32
    %c0_i32_1 = arith.constant 0 : i32
    return %arg0, %c0_i32, %c0_i32_0 : i32, i32, i32
  }
  func.func @transform_1(%arg0: i32) -> (i32, i32, i32) {
    %c0_i32 = arith.constant 0 : i32
    %c0_i32_0 = arith.constant 0 : i32
    %c0_i32_1 = arith.constant 0 : i32
    %c0_i32_2 = arith.constant 0 : i32
    return %c0_i32, %c0_i32_0, %c0_i32_1 : i32, i32, i32
  }
  func.func @transform_2(%arg0: i32) -> (i32, i32) {
    %c0_i32 = arith.constant 0 : i32
    %c0_i32_0 = arith.constant 0 : i32
    %c0_i32_1 = arith.constant 0 : i32
    return %c0_i32, %c0_i32_0 : i32, i32
  }
  func.func @transform_3(%arg0: i32) -> (i32, i32, i32) {
    %c0_i32 = arith.constant 0 : i32
    %c0_i32_0 = arith.constant 0 : i32
    %c0_i32_1 = arith.constant 0 : i32
    return %arg0, %c0_i32, %c0_i32_0 : i32, i32, i32
  }
}

</mosaic_0001>

<bundles_post_ra>
// kernel: tile.8
= control target key start
LH: loop header
LB: loop body
LE: loop exit
PB: predicated region body
PF: predicated region fallthrough
CT: control target
= control target key end

     0   :  { %s28_s0 = inlined_call_operand.vmem [shape: f32[8], index: 0, kind: input, shape index: {}]   ;;  %s29_s1 = inlined_call_operand.vmem [shape: f32[16,8], index: 1, kind: output, shape index: {}]  }
   0x1   :  { %v4_v0 = vld [vmem:[%s28_s0] ss:$0 sm:$0xff] }
   0x2   :  { %5 = vst [vmem:[%s29_s1] sm:$0xff] %v4_v0  ;;  %8 = vst [vmem:[%s29_s1 + $0x8] sm:$0xff] %v4_v0 }

// kernel: tile.9
= control target key start
LH: loop header
LB: loop body
LE: loop exit
PB: predicated region body
PF: predicated region fallthrough
CT: control target
= control target key end

     0   :  { %s131_s10 = smov 120   ;;  %s132_s11 = smov 104   ;;  %vm3_vm0 = vcmask 64512   ;;  %vm9_vm1 = vcmask 1048512   ;;  %vm15_vm2 = vcmask 982912   ;;  %vm21_vm3 = vcmask 917312   ;;  %s207_s0 = inlined_call_operand.vmem [shape: f32[16,8], index: 0, kind: input, shape index: {}]   ;;  %s208_s1 = inlined_call_operand.vmem [shape: f32[1,128], index: 1, kind: output, shape index: {}]  }
   0x1   :  { %v101_v0 = vld [vmem:[%s207_s0 + $0xf] sm:$0x1]   ;;  %v103_v1 = vld [vmem:[%s207_s0 + $0xd] sm:$0x1]   ;;  %v102_v2 = vld [vmem:[%s207_s0 + $0xe] sm:$0x1]  }
   0x2   :  { %7 = vrot.lane.b32.xlu0 %v101_v0, %s131_s10  ;;  %19 = vrot.lane.b32.xlu1 %v103_v1, %s132_s11  ;;  %v104_v3 = vld [vmem:[%s207_s0 + $0xc] sm:$0x1]   ;;  %s133_s16 = smov 112   ;;  %s134_s17 = smov 96   ;;  %v105_v4 = vld [vmem:[%s207_s0 + $0xb] sm:$0x1]  }
   0x3   :  { %v106_v5 = vld [vmem:[%s207_s0 + $0xa] sm:$0x1]   ;;  %v2_v6 = vld [vmem:[%s207_s0] sm:$0x1]   ;;  %s135_s24 = smov 88   ;;  %s136_s25 = smov 80  }
   0x4   :  { %4 = vst.msk [vmem:[#allocation0] sm:$0x1] %vm3_vm0, %v2_v6   ;;  %v107_v7 = vld [vmem:[%s207_s0 + $0x9] sm:$0x1]   ;;  %v108_v8 = vld [vmem:[%s207_s0 + $0x8] sm:$0x1]  }
   0x5   :  { %s137_s30 = smov 72   ;;  %s138_s2 = smov 64   ;;  %v109_v9 = vld [vmem:[%s207_s0 + $0x7] sm:$0x1]   ;;  %v110_v10 = vld [vmem:[%s207_s0 + $0x6] sm:$0x1]  }
   0x6   :  { %13 = vrot.lane.b32.xlu0 %v102_v2, %s133_s16  ;;  %25 = vrot.lane.b32.xlu1 %v104_v3, %s134_s17  ;;  %s139_s7 = smov 56   ;;  %s140_s8 = smov 48   ;;  %v111_v11 = vld [vmem:[%s207_s0 + $0x5] sm:$0x1]   ;;  %v112_v12 = vld [vmem:[%s207_s0 + $0x4] sm:$0x1]  }
   0x7   :  { %s141_s13 = smov 40   ;;  %s142_s14 = smov 32   ;;  %v113_v13 = vld [vmem:[%s207_s0 + $0x3] sm:$0x1]   ;;  %v114_v14 = vld [vmem:[%s207_s0 + $0x2] sm:$0x1]  }
   0x8   :  { %s143_s19 = smov 24   ;;  %s144_s20 = smov 16   ;;  %v115_v15 = vld [vmem:[%s207_s0 + $0x1] sm:$0x1]   ;;  %vm27_vm4 = vcmask 851712   ;;  %vm33_vm5 = vcmask 786112  }
   0x9   :  { %s145_s0 = smov 8   ;;  %vm39_vm6 = vcmask 720512   ;;  %vm45_vm7 = vcmask 654912   ;;  %vm51_vm8 = vcmask 589312   ;;  %vm57_vm9 = vcmask 523712  }
   0xa   :  { %31 = vrot.lane.b32.xlu0 %v105_v4, %s135_s24  ;;  %37 = vrot.lane.b32.xlu1 %v106_v5, %s136_s25  ;;  %vm63_vm10 = vcmask 458112   ;;  %vm69_vm11 = vcmask 392512   ;;  %vm75_vm12 = vcmask 326912   ;;  %vm81_vm13 = vcmask 261312  }
   0xb   :  { %vm87_vm14 = vcmask 195712   ;;  %vm93_vm15 = vcmask 130112  }
   0xe   :  { %43 = vrot.lane.b32.xlu0 %v107_v7, %s137_s30  ;;  %49 = vrot.lane.b32.xlu1 %v108_v8, %s138_s2 }
  0x12   :  { %55 = vrot.lane.b32.xlu0 %v109_v9, %s139_s7  ;;  %61 = vrot.lane.b32.xlu1 %v110_v10, %s140_s8 }
  0x16   :  { %67 = vrot.lane.b32.xlu0 %v111_v11, %s141_s13  ;;  %73 = vrot.lane.b32.xlu1 %v112_v12, %s142_s14 }
  0x1a   :  { %79 = vrot.lane.b32.xlu0 %v113_v13, %s143_s19  ;;  %85 = vrot.lane.b32.xlu1 %v114_v14, %s144_s20 }
  0x1e   :  { %91 = vrot.lane.b32.xlu0 %v115_v15, %s145_s0 }
  0x74   :  { %v8_v16 = vpop.permute.xlu0 %7   ;;  %v20_v17 = vpop.permute.xlu1 %19  }
  0x75   :  { %10 = vst.msk [vmem:[#allocation0] sm:$0x1] %vm9_vm1, %v8_v16  }
  0x78   :  { %v14_v18 = vpop.permute.xlu0 %13   ;;  %v26_v19 = vpop.permute.xlu1 %25  }
  0x79   :  { %16 = vst.msk [vmem:[#allocation0] sm:$0x1] %vm15_vm2, %v14_v18  }
  0x7a   :  { %22 = vst.msk [vmem:[#allocation0] sm:$0x1] %vm21_vm3, %v20_v17  }
  0x7b   :  { %28 = vst.msk [vmem:[#allocation0] sm:$0x1] %vm27_vm4, %v26_v19  }
  0x7c   :  { %v32_v20 = vpop.permute.xlu0 %31   ;;  %v38_v21 = vpop.permute.xlu1 %37  }
  0x7d   :  { %34 = vst.msk [vmem:[#allocation0] sm:$0x1] %vm33_vm5, %v32_v20  }
  0x7e   :  { %40 = vst.msk [vmem:[#allocation0] sm:$0x1] %vm39_vm6, %v38_v21  }
  0x80   :  { %v44_v22 = vpop.permute.xlu0 %43   ;;  %v50_v23 = vpop.permute.xlu1 %49  }
  0x81   :  { %46 = vst.msk [vmem:[#allocation0] sm:$0x1] %vm45_vm7, %v44_v22  }
  0x82   :  { %52 = vst.msk [vmem:[#allocation0] sm:$0x1] %vm51_vm8, %v50_v23  }
  0x84   :  { %v56_v24 = vpop.permute.xlu0 %55   ;;  %v62_v25 = vpop.permute.xlu1 %61  }
  0x85   :  { %58 = vst.msk [vmem:[#allocation0] sm:$0x1] %vm57_vm9, %v56_v24  }
  0x86   :  { %64 = vst.msk [vmem:[#allocation0] sm:$0x1] %vm63_vm10, %v62_v25  }
  0x88   :  { %v68_v26 = vpop.permute.xlu0 %67   ;;  %v74_v27 = vpop.permute.xlu1 %73  }
  0x89   :  { %70 = vst.msk [vmem:[#allocation0] sm:$0x1] %vm69_vm11, %v68_v26  }
  0x8a   :  { %76 = vst.msk [vmem:[#allocation0] sm:$0x1] %vm75_vm12, %v74_v27  }
  0x8c   :  { %v80_v28 = vpop.permute.xlu0 %79   ;;  %v86_v29 = vpop.permute.xlu1 %85  }
  0x8d   :  { %82 = vst.msk [vmem:[#allocation0] sm:$0x1] %vm81_vm13, %v80_v28  }
  0x8e   :  { %88 = vst.msk [vmem:[#allocation0] sm:$0x1] %vm87_vm14, %v86_v29  }
  0x90   :  { %v92_v30 = vpop.permute.xlu0 %91  }
  0x91   :  { %94 = vst.msk [vmem:[#allocation0] sm:$0x1] %vm93_vm15, %v92_v30  }
  0x98   :  { %v98_v31 = vld [vmem:[#allocation0] sm:$0x1] }
  0x99   :  { %100 = vst [vmem:[%s208_s1] sm:$0x1] %v98_v31 }

// kernel: conv_layer.1
= control target key start
LH: loop header
LB: loop body
LE: loop exit
PB: predicated region body
PF: predicated region fallthrough
CT: control target
= control target key end

     0   :  { %s747_s12 = smov 0   ;;  %s862_s0 = inlined_call_operand.vmem [shape: f32[2,18,72], index: 0, kind: input, shape index: {}]   ;;  %s863_s1 = inlined_call_operand.vmem [shape: f32[3,72,128], index: 1, kind: input, shape index: {}]   ;;  %s864_s2 = inlined_call_operand.vmem [shape: f32[1,128], index: 2, kind: input, shape index: {}]   ;;  %s865_s3 = inlined_call_operand.vmem [shape: f32[2,16,128], index: 3, kind: output, shape index: {}]  }
   0x1 LB: > { %s526_s13 = sadd.s32 4294967295, %s725_s12   ;;  %p530_p0 = scmp.ge.s32.totalorder %s725_s12, 1  ;;  %s725_s12 = sphi %s747_s12, %s13_s12  }
   0x2   : > { %p137_p1 = scmp.lt.s32.totalorder %s725_s12, 3 }
   0x4   : > { %p138_p2 = pnand %p530_p0, %p137_p1 }
   0x5   : > { %v174_v0 = vld [vmem:[%s863_s1] sm:$0xff] (!%p138_p2)  ;;  %v175_v1 = vld [vmem:[%s863_s1 + $0x8] sm:$0xff] (!%p138_p2)  ;;  %v176_v2 = vld [vmem:[%s863_s1 + $0x10] sm:$0xff] (!%p138_p2)  ;;  %p161_p3 = scmp.lt.s32.totalorder (!%p138_p2), %s526_s13, 1  ;;  %vm202_vm0 = vcmask (!%p138_p2), 588800   ;;  %vm196_vm1 = vcmask (!%p138_p2), 1046528  }
   0x6   : > { %141 = sbr.rel (%p138_p2) target bundleno = 264 (0x108), region = 32  ;;  %v674_v3 = vpack.c.bf16 (!%p138_p2), %v175_v1, %v174_v0  ;;  %v177_v4 = vld [vmem:[%s863_s1 + $0x18] sm:$0xff] (!%p138_p2)  ;;  %v178_v6 = vld [vmem:[%s863_s1 + $0x20] sm:$0xff] (!%p138_p2)  ;;  %v179_v7 = vld [vmem:[%s863_s1 + $0x28] sm:$0xff] (!%p138_p2)  ;;  %vm371_vm2 = vcmask (!%p138_p2), 1045504  }
   0x7   : > { %v678_v5 = vpack.c.bf16 (!%p138_p2), %v177_v4, %v176_v2  ;;  %v534_v8 = vld [vmem:[%s863_s1 + $0x48] sm:$0xff] (!%p138_p2)  ;;  %v535_v9 = vld [vmem:[%s863_s1 + $0x50] sm:$0xff] (!%p138_p2)  ;;  %v536_v11 = vld [vmem:[%s863_s1 + $0x58] sm:$0xff] (!%p138_p2)  ;;  %v682_v13 = vpack.c.bf16 (!%p138_p2), %v179_v7, %v178_v6 }
   0x8   : > { %675 = vmatprep.subr.bf16.mxu0 (!%p138_p2), %v674_v3  ;;  %v658_v10 = vpack.c.bf16 (!%p138_p2), %v535_v9, %v534_v8  ;;  %v537_v12 = vld [vmem:[%s863_s1 + $0x60] sm:$0xff] (!%p138_p2)  ;;  %v538_v15 = vld [vmem:[%s863_s1 + $0x68] sm:$0xff] (!%p138_p2)  ;;  %v180_v16 = vld [vmem:[%s863_s1 + $0x30] sm:$0xff] (!%p138_p2) }
   0x9   : > { %677 = vmatpush3.bf16.msra.mxu0 (!%p138_p2), %v674_v3  ;;  %v662_v14 = vpack.c.bf16 (!%p138_p2), %v537_v12, %v536_v11  ;;  %v181_v17 = vld [vmem:[%s863_s1 + $0x38] sm:$0xff] (!%p138_p2)  ;;  %v539_v18 = vld [vmem:[%s863_s1 + $0x70] sm:$0xff] (!%p138_p2)  ;;  %v541_v25 = vld [vmem:[%s863_s1 + $0x80] sm:$0xff] (!%p138_p2) }
   0xa   : > { %679 = vmatprep.subr.bf16.mxu0 (!%p138_p2), %v678_v5  ;;  %659 = vmatprep.subr.bf16.mxu1 (!%p138_p2), %v658_v10  ;;  %v666_v22 = vpack.c.bf16 (!%p138_p2), %v539_v18, %v538_v15  ;;  %v686_v23 = vpack.c.bf16 (!%p138_p2), %v181_v17, %v180_v16  ;;  %v540_v24 = vld [vmem:[%s863_s1 + $0x78] sm:$0xff] (!%p138_p2)  ;;  %v182_v29 = vld [vmem:[%s863_s1 + $0x40] sm:$0xff] (!%p138_p2)  ;;  %v547_v31 = vld [vmem:[%s863_s1 + $0x90] sm:$0xff] (!%p138_p2) }
   0xb   : > { %661 = vmatpush3.bf16.msra.mxu1 (!%p138_p2), %v658_v10  ;;  %v670_v28 = vpack.c.bf16 (!%p138_p2), %v541_v25, %v540_v24  ;;  %v548_v32 = vld [vmem:[%s863_s1 + $0x98] sm:$0xff] (!%p138_p2)  ;;  %v549_v35 = vld [vmem:[%s863_s1 + $0xa0] sm:$0xff] (!%p138_p2)  ;;  %v550_v36 = vld [vmem:[%s863_s1 + $0xa8] sm:$0xff] (!%p138_p2) }
   0xc   : > { %663 = vmatprep.subr.bf16.mxu1 (!%p138_p2), %v662_v14  ;;  %v690_v38 = vpack.c.bf16 (!%p138_p2), %v548_v32, %v547_v31  ;;  %v542_v39 = vld [vmem:[%s863_s1 + $0x88] sm:$0xff] (!%p138_p2)  ;;  %v694_v40 = vpack.c.bf16 (!%p138_p2), %v550_v36, %v549_v35  ;;  %v551_v42 = vld [vmem:[%s863_s1 + $0xb0] sm:$0xff] (!%p138_p2)  ;;  %v552_v43 = vld [vmem:[%s863_s1 + $0xb8] sm:$0xff] (!%p138_p2) }
   0xd   : > { %s867_s13 = smov (!%p161_p3, %s526_s13), 1  ;;  %681 = vmatpush3.bf16.msra.mxu0 %v678_v5  ;;  %v698_v45 = vpack.c.bf16 %v552_v43, %v551_v42  ;;  %v553_v46 = vld [vmem:[%s863_s1 + $0xc0] sm:$0xff]  ;;  %v554_v47 = vld [vmem:[%s863_s1 + $0xc8] sm:$0xff]  ;;  %v555_v50 = vld [vmem:[%s863_s1 + $0xd0] sm:$0xff] }
   0xe   : > { %s710_s30 = smul.u32 24, %s867_s13  ;;  %683 = vmatprep.subr.bf16.mxu0 %v682_v13  ;;  %v702_v48 = vpack.c.bf16 %v554_v47, %v553_v46  ;;  %v558_v55 = vld [vmem:[%s864_s2] ss:$0 sm:$0xff]  ;;  %s561_s24 = sshll.u32 %s867_s13, 4 }
   0xf   : > { %665 = vmatpush3.bf16.msra.mxu1 %v662_v14  ;;  %s170_s27 = scalar_lea.vmem %s865_s3, %s561_s24 }
  0x10   : > { %s165_s18 = scalar_lea.vmem %s862_s0, %s710_s30  ;;  %667 = vmatprep.subr.bf16.mxu1 %v666_v22 }
  0x11   : > { %v171_v19 = vld [vmem:[%s165_s18] sm:$0xff]  ;;  %v172_v21 = vld [vmem:[%s165_s18 + $0x8] sm:$0xff]  ;;  %685 = vmatpush3.bf16.msra.mxu0 %v682_v13  ;;  %v173_v30 = vld [vmem:[%s165_s18 + $0x10] sm:$0x3] }
  0x12   : > { %v197_v20 = vrot.slane %v171_v19, 1  ;;  %634 = vmatprep.mubr.msk.f32.mxu0 %vm202_vm0, %v171_v19  ;;  %v198_v26 = vrot.slane %v172_v21, 1  ;;  %687 = vmatprep.subr.bf16.mxu0 %v686_v23  ;;  %v372_v33 = vrot.slane %v171_v19, 2  ;;  %v373_v34 = vrot.slane %v172_v21, 2 }
  0x13   : > { %669 = vmatpush3.bf16.msra.mxu1 %v666_v22  ;;  %v200_v37 = vrot.slane %v173_v30, 1  ;;  %v375_v49 = vrot.slane %v173_v30, 2 }
  0x14   : > { %v199_v27 = vsel %vm196_vm1, %v197_v20, %v198_v26  ;;  %671 = vmatprep.subr.bf16.mxu1 %v670_v28  ;;  %v374_v41 = vsel %vm371_vm2, %v372_v33, %v373_v34 }
  0x15   : > { %613 = vmatprep.mubr.msk.f32.mxu1 %vm202_vm0, %v199_v27  ;;  %689 = vmatpush3.bf16.msra.mxu0 %v686_v23  ;;  %v201_v44 = vsel %vm196_vm1, %v198_v26, %v200_v37  ;;  %v376_v51 = vsel %vm371_vm2, %v373_v34, %v375_v49 }
  0x16   : > { %632 = vmatprep.subr.mxu0 %v182_v29 }
  0x17   : > { %673 = vmatpush3.bf16.msra.mxu1 %v670_v28 }
  0x18   : > { %611 = vmatprep.subr.mxu1 %v542_v39 }
  0x19   : > { %633 = vmatpush3.msra.mxu0 %v182_v29 }
  0x1a   : > { %691 = vmatprep.subr.bf16.mxu0 %v690_v38  ;;  %635 = vmatmul.mubr.msk.f32.vlgmr.msra.gmra.mrb[0].mxu0 %vm202_vm0, %v172_v21 }
  0x1b   : > { %693 = vmatpush3.bf16.msra.mxu0 %v690_v38  ;;  %655 = vmatprep.mubr.msk.f32.mxu0 %vm202_vm0, %v374_v41 }
  0x1c   : > { %695 = vmatprep.subr.bf16.mxu0 %v694_v40  ;;  %612 = vmatpush3.msra.mxu1 %v542_v39 }
  0x1d   : > { %614 = vmatmul.mubr.msk.f32.vlgmr.msra.gmra.mrb[0].mxu1 %vm202_vm0, %v201_v44 }
  0x1f   : > { %697 = vmatpush3.bf16.msra.mxu0 %v694_v40 }
  0x20   : > { %699 = vmatprep.subr.bf16.mxu0 %v698_v45 }
  0x23   : > { %701 = vmatpush3.bf16.msra.mxu0 %v698_v45 }
  0x24   : > { %703 = vmatprep.subr.bf16.mxu0 %v702_v48 }
  0x27   : > { %705 = vmatpush3.bf16.msra.mxu0 %v702_v48 }
  0x28   : > { %653 = vmatprep.subr.mxu0 %v555_v50 }
  0x2b   : > { %654 = vmatpush3.msra.mxu0 %v555_v50 }
  0x2c   : > { %656 = vmatmul.mubr.msk.f32.vlgmr.msra.gmra.mrb[0].mxu0 %vm202_vm0, %v376_v51 }
  0xf0   : > { %v615_v52 = vpop.f32.mrb[0].mxu1 }
  0xf1   : > { %v273_v53 = vpop.f32.mrb[1].mxu1 }
  0xff   : > { %v657_v54 = vpop.f32.mrb[0].mxu0 }
 0x100   : > { %v706_v56 = vadd.f32 %v657_v54, %v615_v52  ;;  %v447_v57 = vpop.f32.mrb[1].mxu0 }
 0x101   : > { %v707_v58 = vadd.f32 %v447_v57, %v273_v53 }
 0x102   : > { %v466_v59 = vadd.f32 %v706_v56, %v558_v55 }
 0x103   : > { %v465_v60 = vadd.f32 %v707_v58, %v558_v55 }
 0x104   : > { %v468_v61 = vmax.f32 %v466_v59, 0.0 }
 0x105   : > { %v467_v62 = vmax.f32 %v465_v60, 0.0 }
 0x106   : > { %470 = vst [vmem:[%s170_s27 + $0x8] sm:$0xff] %v468_v61 }
 0x107   : > { %469 = vst [vmem:[%s170_s27] sm:$0xff] %v467_v62 }
 0x108 PF: > { %s13_s12 = sadd.s32 1, %s725_s12  }
 0x109   : > { %p10_p4 = scmp.ge.s32.totalorder %s13_s12, 4  }
 0x10b   :  { %12 = sbr.rel (!%p10_p4) target bundleno = 1 (0x1), region = 64 }

</bundles_post_ra>
